<compile_context>
chip_gen: v6e
topology: v6e:2x2x1
jax: 0.10.0
libtpu: 0.0.40
codegen_flags: <defaults>
</compile_context>

<pallas_src>
import functools

import jax
import jax.numpy as jnp
from jax.experimental import pallas as pl
from jax.experimental.pallas import tpu as pltpu

LANES = 128
SUBLANES = 8
CHUNK_ROWS = 256  # rows per inner sub-chunk (256*128*4B = 128 KiB per temp)


def _pow(x, p):
    # p is static: keep common cases on cheap VPU ops.
    if p == 1:
        return x
    if p == 2:
        return x * x
    return x ** p


def _num_tensorcores():
    """Best-effort TensorCore count per chip (2 on v7x, 1 on v5e/v6e).

    A fake 'parallel' core axis on single-TC parts only fragments the grid,
    so default to 1 unless the runtime clearly reports more.
    """
    try:
        info = pltpu.get_tpu_info()
    except Exception:
        return 1
    for attr in ("num_cores", "core_count", "tensorcores_per_chip",
                 "num_tensorcores"):
        v = getattr(info, attr, None)
        if isinstance(v, int) and v > 1:
            return min(2, v)
    return 1


def _soft_dice_kernel(logits_ref, labels_ref, numer_ref, denor_ref, *,
                      p, block_rows, chunk_rows, steps_per_core,
                      n_valid, needs_mask):
    """Per-core (8,128) partial sums of sigmoid(x)*y and sigmoid(x)^p + y^p.

    grid = (cores, steps).  Output blocks are indexed only by the core axis, so
    they stay VMEM-resident across the (arbitrary) step axis and act as (8,128)
    vector accumulators.  The block touching (or past) the data boundary is
    masked with an iota against the valid element count.
    """
    c = pl.program_id(0)
    i = pl.program_id(1)

    @pl.when(i == 0)
    def _init():
        numer_ref[...] = jnp.zeros_like(numer_ref)
        denor_ref[...] = jnp.zeros_like(denor_ref)

    block_row0 = (c * steps_per_core + i) * block_rows
    n_chunks = block_rows // chunk_rows
    r8 = chunk_rows // SUBLANES

    def accum_chunk(k, masked):
        off = pl.multiple_of(k * chunk_rows, chunk_rows)
        x = logits_ref[pl.ds(off, chunk_rows), :].astype(jnp.float32)
        y = labels_ref[pl.ds(off, chunk_rows), :].astype(jnp.float32)
        # sigmoid via a single EUP tanh (no divide on the VALU slot).
        probs = 0.5 * jnp.tanh(0.5 * x) + 0.5
        prod = probs * y
        den = _pow(probs, p) + _pow(y, p)
        if masked:
            row_ids = (block_row0 + off +
                       jax.lax.broadcasted_iota(jnp.int32,
                                                (chunk_rows, LANES), 0))
            lane_ids = jax.lax.broadcasted_iota(jnp.int32,
                                                (chunk_rows, LANES), 1)
            valid = (row_ids * LANES + lane_ids) < n_valid
            prod = jnp.where(valid, prod, 0.0)
            den = jnp.where(valid, den, 0.0)
        numer_ref[...] += jnp.sum(prod.reshape(r8, SUBLANES, LANES), axis=0)
        denor_ref[...] += jnp.sum(den.reshape(r8, SUBLANES, LANES), axis=0)

    if needs_mask:
        # Only the block(s) covering / beyond the data boundary pay the mask.
        boundary = (block_row0 + block_rows) * LANES > n_valid

        @pl.when(boundary)
        def _masked():
            @pl.loop(0, n_chunks)
            def _(k):
                accum_chunk(k, True)

        @pl.when(jnp.logical_not(boundary))
        def _full():
            @pl.loop(0, n_chunks)
            def _(k):
                accum_chunk(k, False)
    else:
        @pl.loop(0, n_chunks)
        def _(k):
            accum_chunk(k, False)


def soft_dice_loss_v1(logits, labels, p=1, smooth=0.001,
                      block_rows=None, num_parallel=None):
    """JAX/Pallas equivalent of SoftDiceLossV1.forward (returns a scalar).

    Matches the PyTorch module as written: returns (2*numer+smooth)/(denor+smooth).
    """
    assert logits.shape == labels.shape, "logits and labels must match in shape"

    n = int(logits.size)
    if n == 0:
        return jnp.float32(1.0)  # (2*0 + smooth) / (0 + smooth)

    lf = jnp.ravel(logits)   # free for contiguous inputs; dtype preserved
    gf = jnp.ravel(labels)

    rows = -(-n // LANES)    # ceil(n / 128)

    if rows < SUBLANES:
        # Tiny input (< 1024 elems): one vreg of work, no kernel needed.
        x = lf.astype(jnp.float32)
        y = gf.astype(jnp.float32)
        probs = jax.nn.sigmoid(x)
        numer = jnp.sum(probs * y)
        denor = jnp.sum(_pow(probs, p) + _pow(y, p))
        return (2.0 * numer + smooth) / (denor + smooth)

    pad = rows * LANES - n
    if pad:
        # Only when numel is not a multiple of 128: one unavoidable copy so the
        # flat array can be viewed as (rows, 128).  Padded tail is masked
        # in-kernel, so the pad value is irrelevant.
        lf = jnp.pad(lf, (0, pad))
        gf = jnp.pad(gf, (0, pad))
    lb = lf.reshape(rows, LANES)   # free view when no pad
    gb = gf.reshape(rows, LANES)

    in_itemsize = jnp.dtype(lb.dtype).itemsize + jnp.dtype(gb.dtype).itemsize
    if block_rows is None:
        # Bigger blocks for narrower dtypes at the same VMEM footprint.
        block_rows = 8192 if in_itemsize >= 8 else 16384

    # Block rows: multiple of 8, <= rows, and a multiple of the inner chunk.
    chunk = min(CHUNK_ROWS, block_rows)
    br = min(block_rows, (rows // SUBLANES) * SUBLANES)
    if br >= chunk:
        br = (br // chunk) * chunk
    else:
        chunk = br

    steps_total = -(-rows // br)
    nc = num_parallel if num_parallel is not None else _num_tensorcores()
    nc = max(1, min(nc, steps_total))
    spc = -(-steps_total // nc)              # steps per core
    needs_mask = (nc * spc * br * LANES) != n

    block_bytes = br * LANES * in_itemsize
    # Double-buffered inputs + headroom; raised explicitly so large blocks also
    # fit v5e's 16 MiB scoped default (physical VMEM is far larger everywhere).
    vmem_limit = int(min(96 << 20, max(32 << 20, 2 * block_bytes + (4 << 20))))

    cost = pl.CostEstimate(
        flops=10 * n,
        transcendentals=n,
        bytes_accessed=rows * LANES * in_itemsize + 2 * nc * SUBLANES * LANES * 4,
    )

    last_block = steps_total - 1
    # Clamp in case nc does not divide steps_total (fully-OOB blocks are
    # zeroed by the in-kernel mask regardless of which window gets loaded).
    in_map = lambda c, i: (jnp.minimum(c * spc + i, last_block), 0)
    out_map = lambda c, i: (c, 0)

    kernel = functools.partial(
        _soft_dice_kernel, p=p, block_rows=br, chunk_rows=chunk,
        steps_per_core=spc, n_valid=n, needs_mask=needs_mask)

    numer_p, denor_p = pl.pallas_call(
        kernel,
        out_shape=(
            jax.ShapeDtypeStruct((nc * SUBLANES, LANES), jnp.float32),
            jax.ShapeDtypeStruct((nc * SUBLANES, LANES), jnp.float32),
        ),
        grid_spec=pltpu.PrefetchScalarGridSpec(
            num_scalar_prefetch=0,
            grid=(nc, spc),
            in_specs=[
                pl.BlockSpec((br, LANES), in_map),
                pl.BlockSpec((br, LANES), in_map),
            ],
            out_specs=(
                pl.BlockSpec((SUBLANES, LANES), out_map),
                pl.BlockSpec((SUBLANES, LANES), out_map),
            ),
        ),
        compiler_params=pltpu.CompilerParams(
            dimension_semantics=("parallel", "arbitrary"),
            vmem_limit_bytes=vmem_limit),
        cost_estimate=cost,
    )(lb, gb)

    numer = jnp.sum(numer_p)
    denor = jnp.sum(denor_p)
    # Matches the PyTorch module as written: returns the dice ratio.
    return (2.0 * numer + smooth) / (denor + smooth)


def _reference(logits, labels, p=1, smooth=0.001):
    probs = jax.nn.sigmoid(logits.astype(jnp.float32))
    labels = labels.astype(jnp.float32)
    numer = jnp.sum(probs * labels)
    denor = jnp.sum(probs ** p + labels ** p)
    return (2.0 * numer + smooth) / (denor + smooth)


if __name__ == "__main__":
    key = jax.random.PRNGKey(0)
    k1, k2 = jax.random.split(key)

    # Small shapes consistent with (N, H, W, ...) binary-segmentation inputs.
    logits = jax.random.normal(k1, (2, 4, 16, 16), dtype=jnp.float32)
    labels = (jax.random.uniform(k2, (2, 4, 16, 16)) > 0.5).astype(jnp.float32)

    loss = jax.block_until_ready(soft_dice_loss_v1(logits, labels, p=1))
    ref = _reference(logits, labels, p=1)
    assert jnp.allclose(loss, ref, rtol=1e-5, atol=1e-6), (loss, ref)

    # p=2 path (VPU square, no pow).
    loss2 = jax.block_until_ready(soft_dice_loss_v1(logits, labels, p=2))
    ref2 = _reference(logits, labels, p=2)
    assert jnp.allclose(loss2, ref2, rtol=1e-5, atol=1e-6), (loss2, ref2)

    # Size not a multiple of the block (but multiple of 128): exercises the
    # in-kernel masked boundary block, with zero wrapper-side copies.
    k3, k4 = jax.random.split(k2)
    lg3 = jax.random.normal(k3, (2, 3, 16, 16), dtype=jnp.float32)
    lb3 = (jax.random.uniform(k4, (2, 3, 16, 16)) > 0.5).astype(jnp.float32)
    loss3 = jax.block_until_ready(soft_dice_loss_v1(lg3, lb3, p=1))
    ref3 = _reference(lg3, lb3, p=1)
    assert jnp.allclose(loss3, ref3, rtol=1e-5, atol=1e-6), (loss3, ref3)

    # Size not a multiple of 128: exercises the pad + masked boundary path.
    k5, k6 = jax.random.split(k4)
    lg4 = jax.random.normal(k5, (3, 5, 7, 11), dtype=jnp.float32)
    lb4 = (jax.random.uniform(k6, (3, 5, 7, 11)) > 0.5).astype(jnp.float32)
    loss4 = jax.block_until_ready(soft_dice_loss_v1(lg4, lb4, p=1))
    ref4 = _reference(lg4, lb4, p=1)
    assert jnp.allclose(loss4, ref4, rtol=1e-5, atol=1e-6), (loss4, ref4)

    print("KERNEL_OK")
</pallas_src>

<mosaic_0001>
module attributes {stable_mosaic.version = 11 : i64} {
  func.func @_soft_dice_kernel(%arg0: i32, %arg1: i32, %arg2: memref<16x128xf32, #tpu.memory_space<vmem>>, %arg3: memref<16x128xf32, #tpu.memory_space<vmem>>, %arg4: memref<8x128xf32, #tpu.memory_space<vmem>>, %arg5: memref<8x128xf32, #tpu.memory_space<vmem>>) attributes {dimension_semantics = [#tpu.dimension_semantics<parallel>, #tpu.dimension_semantics<arbitrary>], iteration_bounds = array<i64: 1, 1>, scalar_prefetch = 0 : i64, scratch_operands = 0 : i64, tpu.core_type = #tpu.core_type<tc>, window_params = [{transform_indices = @transform_0, window_bounds = array<i64: 16, 128>}, {transform_indices = @transform_1, window_bounds = array<i64: 16, 128>}, {transform_indices = @transform_2, window_bounds = array<i64: 8, 128>}, {transform_indices = @transform_3, window_bounds = array<i64: 8, 128>}]} {
    %c0_i32 = arith.constant 0 : i32
    %0 = arith.cmpi eq, %arg1, %c0_i32 : i32
    %1 = arith.extui %0 : i1 to i32
    %c0_i32_0 = arith.constant 0 : i32
    %2 = arith.cmpi ne, %1, %c0_i32_0 : i32
    scf.if %2 {
      %cst_17 = arith.constant 0.000000e+00 : f32
      %30 = vector.broadcast %cst_17 : f32 to vector<8x128xf32>
      %c0_18 = arith.constant 0 : index
      %c0_19 = arith.constant 0 : index
      %31 = vector.load %arg4[%c0_18, %c0_19] : memref<8x128xf32, #tpu.memory_space<vmem>>, vector<8x128xf32>
      tpu.vector_store %arg4[%c0_18, %c0_19], %30 {strides = array<i32>} : memref<8x128xf32, #tpu.memory_space<vmem>>, vector<8x128xf32>,
      %cst_20 = arith.constant 0.000000e+00 : f32
      %32 = vector.broadcast %cst_20 : f32 to vector<8x128xf32>
      %c0_21 = arith.constant 0 : index
      %c0_22 = arith.constant 0 : index
      %33 = vector.load %arg5[%c0_21, %c0_22] : memref<8x128xf32, #tpu.memory_space<vmem>>, vector<8x128xf32>
      tpu.vector_store %arg5[%c0_21, %c0_22], %32 {strides = array<i32>} : memref<8x128xf32, #tpu.memory_space<vmem>>, vector<8x128xf32>,
    } else {
    }
    %c0_i32_1 = arith.constant 0 : i32
    %c1_i32 = arith.constant 1 : i32
    %3 = arith.muli %c0_i32_1, %c1_i32 : i32
    %c0_i32_2 = arith.constant 0 : i32
    %4 = arith.addi %c0_i32_2, %3 : i32
    %c16_i32 = arith.constant 16 : i32
    %5 = arith.muli %4, %c16_i32 : i32
    %6 = tpu.assume_multiple %5, 16 : i32
    %7 = arith.index_cast %6 : i32 to index
    %c0 = arith.constant 0 : index
    %8 = vector.load %arg2[%7, %c0] : memref<16x128xf32, #tpu.memory_space<vmem>>, vector<16x128xf32>
    %9 = arith.index_cast %6 : i32 to index
    %c0_3 = arith.constant 0 : index
    %10 = vector.load %arg3[%9, %c0_3] : memref<16x128xf32, #tpu.memory_space<vmem>>, vector<16x128xf32>
    %cst = arith.constant 5.000000e-01 : f32
    %11 = vector.broadcast %cst : f32 to vector<16x128xf32>
    %12 = arith.mulf %11, %8 : vector<16x128xf32>
    %13 = math.tanh %12 : vector<16x128xf32>
    %cst_4 = arith.constant 5.000000e-01 : f32
    %14 = vector.broadcast %cst_4 : f32 to vector<16x128xf32>
    %15 = arith.mulf %14, %13 : vector<16x128xf32>
    %cst_5 = arith.constant 5.000000e-01 : f32
    %16 = vector.broadcast %cst_5 : f32 to vector<16x128xf32>
    %17 = arith.addf %15, %16 : vector<16x128xf32>
    %18 = arith.mulf %17, %10 : vector<16x128xf32>
    %19 = arith.addf %17, %10 : vector<16x128xf32>
    %c0_6 = arith.constant 0 : index
    %c0_7 = arith.constant 0 : index
    %20 = vector.load %arg4[%c0_6, %c0_7] : memref<8x128xf32, #tpu.memory_space<vmem>>, vector<8x128xf32>
    %21 = vector.shape_cast %18 : vector<16x128xf32> to vector<2x8x128xf32>
    %cst_8 = arith.constant dense<0.000000e+00> : vector<8x128xf32>
    %22 = vector.multi_reduction <add>, %21, %cst_8 [0] : vector<2x8x128xf32> to vector<8x128xf32>
    %23 = arith.addf %20, %22 : vector<8x128xf32>
    %c0_9 = arith.constant 0 : index
    %c0_10 = arith.constant 0 : index
    %24 = vector.load %arg4[%c0_9, %c0_10] : memref<8x128xf32, #tpu.memory_space<vmem>>, vector<8x128xf32>
    tpu.vector_store %arg4[%c0_9, %c0_10], %23 {strides = array<i32>} : memref<8x128xf32, #tpu.memory_space<vmem>>, vector<8x128xf32>,
    %c0_11 = arith.constant 0 : index
    %c0_12 = arith.constant 0 : index
    %25 = vector.load %arg5[%c0_11, %c0_12] : memref<8x128xf32, #tpu.memory_space<vmem>>, vector<8x128xf32>
    %26 = vector.shape_cast %19 : vector<16x128xf32> to vector<2x8x128xf32>
    %cst_13 = arith.constant dense<0.000000e+00> : vector<8x128xf32>
    %27 = vector.multi_reduction <add>, %26, %cst_13 [0] : vector<2x8x128xf32> to vector<8x128xf32>
    %28 = arith.addf %25, %27 : vector<8x128xf32>
    %c0_14 = arith.constant 0 : index
    %c0_15 = arith.constant 0 : index
    %29 = vector.load %arg5[%c0_14, %c0_15] : memref<8x128xf32, #tpu.memory_space<vmem>>, vector<8x128xf32>
    tpu.vector_store %arg5[%c0_14, %c0_15], %28 {strides = array<i32>} : memref<8x128xf32, #tpu.memory_space<vmem>>, vector<8x128xf32>,
    %c1_i32_16 = arith.constant 1 : i32
    return
  }
  func.func @transform_0(%arg0: i32, %arg1: i32) -> (i32, i32) {
    %c1_i32 = arith.constant 1 : i32
    %0 = arith.muli %arg0, %c1_i32 : i32
    %1 = arith.addi %0, %arg1 : i32
    %c0_i32 = arith.constant 0 : i32
    %2 = arith.minsi %1, %c0_i32 : i32
    %c0_i32_0 = arith.constant 0 : i32
    %c0_i32_1 = arith.constant 0 : i32
    return %2, %c0_i32_0 : i32, i32
  }
  func.func @transform_1(%arg0: i32, %arg1: i32) -> (i32, i32) {
    %c1_i32 = arith.constant 1 : i32
    %0 = arith.muli %arg0, %c1_i32 : i32
    %1 = arith.addi %0, %arg1 : i32
    %c0_i32 = arith.constant 0 : i32
    %2 = arith.minsi %1, %c0_i32 : i32
    %c0_i32_0 = arith.constant 0 : i32
    %c0_i32_1 = arith.constant 0 : i32
    return %2, %c0_i32_0 : i32, i32
  }
  func.func @transform_2(%arg0: i32, %arg1: i32) -> (i32, i32) {
    %c0_i32 = arith.constant 0 : i32
    %c0_i32_0 = arith.constant 0 : i32
    return %arg0, %c0_i32 : i32, i32
  }
  func.func @transform_3(%arg0: i32, %arg1: i32) -> (i32, i32) {
    %c0_i32 = arith.constant 0 : i32
    %c0_i32_0 = arith.constant 0 : i32
    return %arg0, %c0_i32 : i32, i32
  }
}

</mosaic_0001>

<bundles_post_ra>
// kernel: tpu_custom_call.1
= control target key start
LH: loop header
LB: loop body
LE: loop exit
PB: predicated region body
PF: predicated region fallthrough
CT: control target
= control target key end

     0   :  { %9 = vsyncpa [#allocation3], 0  ;;  %s264_s0 = inlined_call_operand.hbm [shape: f32[16,128], index: 0, kind: input, shape index: {}]   ;;  %s265_s1 = inlined_call_operand.hbm [shape: f32[16,128], index: 1, kind: input, shape index: {}]   ;;  %s266_s2 = inlined_call_operand.hbm [shape: f32[8,128], index: 2, kind: output, shape index: {0}]   ;;  %s267_s3 = inlined_call_operand.hbm [shape: f32[8,128], index: 3, kind: output, shape index: {1}]  }
   0x1   :  { %10 = vsyncpa [#allocation6], 0 }
   0x2   :  { %11 = vsyncpa [#allocation4], 0 }
   0x3   :  { %12 = vsyncpa [#allocation9], 0  ;;  %s226_s12 = smov [#allocation2]  }
   0x4   :  { %s24_s13 = sshll.u32 %s226_s12, 4  ;;  %s25_s13 = int_to_ptr.vmem [resolvable:$true] %s24_s13 }
   0x5   :  { %s146_s14 = scalar_lea.vmem %s25_s13, 256  ;;  %p151_p1 = scmp.lt.s32.totalorder %s25_s13, %s25_s13 }
   0x6   :  { %p147_p0 = scmp.ne.s32.totalorder %s25_s13, %s146_s14  ;;  %p152_p2 = scmp.lt.s32.totalorder %s146_s14, %s146_s14 }
   0x8   :  { %p153_p3 = por %p152_p2, %p151_p1 }
   0xa   :  { %p154_p4 = pnand %p153_p3, %p147_p0 }
   0xc   :  { %157 = shalt.err (!%p154_p4)
}
   0xd   :  { %s227_s15 = smov 128   ;;  %s228_s16 = smov 8  }
   0xe   :  { %30 = dma.hbm_to_vmem [thread:$0]  %s264_s0, 256, %s25_s13, [#allocation3], %s227_s15, %s227_s15, %s228_s16  }
   0xf   :  { %s229_s19 = smov [#allocation5]  }
  0x10   :  { %s42_s20 = sshll.u32 %s229_s19, 4  ;;  %s43_s20 = int_to_ptr.vmem [resolvable:$true] %s42_s20 }
  0x11   :  { %s166_s21 = scalar_lea.vmem %s43_s20, 256  ;;  %p171_p6 = scmp.lt.s32.totalorder %s43_s20, %s43_s20 }
  0x12   :  { %p167_p5 = scmp.ne.s32.totalorder %s43_s20, %s166_s21  ;;  %p172_p7 = scmp.lt.s32.totalorder %s166_s21, %s166_s21 }
  0x14   :  { %p173_p8 = por %p172_p7, %p171_p6 }
  0x16   :  { %p174_p9 = pnand %p173_p8, %p167_p5 }
  0x18   :  { %177 = shalt.err (!%p174_p9)
}
  0x19   :  { %48 = dma.hbm_to_vmem [thread:$0]  %s265_s1, 256, %s43_s20, [#allocation6], %s227_s15, %s227_s15, %s228_s16  }
  0x1a   :  { %218 = dma.done.wait [#allocation3], 256  }
  0x1b   :  { %219 = vsyncadd [#allocation3], 4294967040 }
  0x1c   :  { %220 = dma.done.wait [#allocation6], 256  }
  0x1d   :  { %221 = vsyncadd [#allocation6], 4294967040  ;;  %v69_v0 = vld [vmem:[#allocation2] sm:$0xff]  ;;  %v70_v1 = vld [vmem:[#allocation2 + $0x8] sm:$0xff]  ;;  %s230_s0 = smov [#allocation7]   ;;  %s231_s24 = smov [#allocation8]  }
  0x1e   :  { %v73_v2 = vmul.f32 0.5, %v69_v0  ;;  %v74_v3 = vmul.f32 0.5, %v70_v1  ;;  %v71_v7 = vld [vmem:[#allocation5] sm:$0xff]  ;;  %v72_v9 = vld [vmem:[#allocation5 + $0x8] sm:$0xff]  ;;  %s99_s1 = sshll.u32 %s230_s0, 4  ;;  %s109_s25 = sshll.u32 %s231_s24, 4  ;;  %s100_s1 = int_to_ptr.vmem [resolvable:$true] %s99_s1  ;;  %s110_s25 = int_to_ptr.vmem [resolvable:$true] %s109_s25 }
  0x1f   :  { %s178_s26 = scalar_lea.vmem %s100_s1, 128  ;;  %p183_p11 = scmp.lt.s32.totalorder %s100_s1, %s100_s1 }
  0x20   :  { %134 = vtanh.f32 %v73_v2  ;;  %p179_p10 = scmp.ne.s32.totalorder %s100_s1, %s178_s26  ;;  %p184_p12 = scmp.lt.s32.totalorder %s178_s26, %s178_s26 }
  0x21   :  { %136 = vtanh.f32 %v74_v3 }
  0x22   :  { %p185_p13 = por %p184_p12, %p183_p11 }
  0x24   :  { %p186_p0 = pnand %p185_p13, %p179_p10 }
  0x2d   :  { %v135_v4 = vpop.eup %134 }
  0x2e   :  { %v137_v5 = vpop.eup %136  ;;  %v77_v6 = vmul.f32 0.5, %v135_v4 }
  0x2f   :  { %v78_v8 = vmul.f32 0.5, %v137_v5 }
  0x30   :  { %v79_v10 = vadd.f32 0.5, %v77_v6 }
  0x31   :  { %v80_v11 = vadd.f32 0.5, %v78_v8 }
  0x32   :  { %v81_v12 = vmul.f32 %v79_v10, %v71_v7  ;;  %v83_v13 = vadd.f32 %v79_v10, %v71_v7 }
  0x33   :  { %v82_v14 = vmul.f32 %v80_v11, %v72_v9  ;;  %v84_v15 = vadd.f32 %v80_v11, %v72_v9 }
  0x35   :  { %v86_v16 = vadd.f32 %v82_v14, %v81_v12  ;;  %v90_v17 = vadd.f32 %v84_v15, %v83_v13 }
  0x37   :  { %88 = vst [vmem:[#allocation7] sm:$0xff] %v86_v16  ;;  %92 = vst [vmem:[#allocation8] sm:$0xff] %v90_v17 }
  0x38   :  { %189 = shalt.err (!%p186_p0)
}
  0x39   :  { %102 = dma.vmem_to_hbm [thread:$0]  %s100_s1, 128, %s266_s2, [#allocation4]  }
  0x3a   :  { %s198_s29 = scalar_lea.vmem %s110_s25, 128  ;;  %p203_p2 = scmp.lt.s32.totalorder %s110_s25, %s110_s25 }
  0x3b   :  { %p199_p1 = scmp.ne.s32.totalorder %s110_s25, %s198_s29  ;;  %p204_p3 = scmp.lt.s32.totalorder %s198_s29, %s198_s29 }
  0x3d   :  { %p205_p4 = por %p204_p3, %p203_p2 }
  0x3f   :  { %p206_p5 = pnand %p205_p4, %p199_p1 }
  0x41   :  { %209 = shalt.err (!%p206_p5)
}
  0x42   :  { %112 = dma.vmem_to_hbm [thread:$0]  %s110_s25, 128, %s267_s3, [#allocation9]  }
  0x43   :  { %222 = dma.done.wait [#allocation4], 128  }
  0x44   :  { %223 = vsyncadd [#allocation4], 4294967168 }
  0x45   :  { %224 = dma.done.wait [#allocation9], 128  }
  0x46   :  { %225 = vsyncadd [#allocation9], 4294967168 }
  0x47   :  { %119 = vsyncpa [#allocation3], 1 }
  0x48   :  { %120 = vsyncpa [#allocation6], 1 }
  0x49   :  { %121 = vsyncpa [#allocation4], 1 }
  0x4a   :  { %122 = vsyncpa [#allocation9], 1 }

</bundles_post_ra>
